<compile_context>
chip_gen: v7x
topology: tpu7x:2x2x1
jax: 0.10.0
libtpu: 0.0.40
codegen_flags: <defaults>
</compile_context>

<pallas_src>
import math
import jax
import jax.numpy as jnp
from jax.experimental import pallas as pl
from jax.experimental.pallas import tpu as pltpu


def flz_lstm_kernel(x_ref, pct_ref, hc0_ref, wihb_ref, whh_ref, whead_ref,
                    out_ref):
    """Whole problem fits in VMEM; single grid point.

    x_ref    : (T*B, I)    time-major flattened input (row t*B + b)
    pct_ref  : (B, 4)      extra features concatenated with h_n
    hc0_ref  : (2, B, H)   [h0; c0]
    wihb_ref : (I+1, 4H)   rows 0:I = W_ih^T, row I = b_ih + b_hh
    whh_ref  : (H, 4H)     fused recurrent weights (PyTorch gate order i,f,g,o)
    whead_ref: (H+5, O)    rows 0:H = W_out_h, rows H:H+4 = W_out_pct,
                           row H+4 = b_out
    out_ref  : (B, O)      log-softmax output
    """
    B = hc0_ref.shape[1]
    H = hc0_ref.shape[2]
    I = x_ref.shape[1]
    T = x_ref.shape[0] // B

    # ---- hoisted input projection: one (T*B, I) x (I, 4H) matmul ----------
    wih = wihb_ref[pl.ds(0, I), :]                                  # (I, 4H)
    b_g = wihb_ref[pl.ds(I, 1), :]                                  # (1, 4H)
    xw_all = (jnp.dot(x_ref[...], wih,
                      preferred_element_type=jnp.float32)
              + b_g)                                                # (T*B, 4H)

    # ---- pct head contribution: computed once, off the serial epilogue ----
    w_p = whead_ref[pl.ds(H, 4), :]                                 # (4, O)
    b_o = whead_ref[pl.ds(H + 4, 1), :]                             # (1, O)
    pct_bias = (jnp.dot(pct_ref[...], w_p,
                        preferred_element_type=jnp.float32)
                + b_o)                                              # (B, O)

    # Loop-invariant fused recurrent weights (4 dense vregs).
    whh = whh_ref[...]                                              # (H, 4H)

    h = hc0_ref[0]                                                  # (B, H)
    c = hc0_ref[1]                                                  # (B, H)

    # T is static and tiny -> fully unrolled Python loop; row slices of
    # xw_all are static, so per-step data lives entirely in registers.
    for t in range(T):
        pre = (xw_all[t * B:(t + 1) * B, :]
               + jnp.dot(h, whh,
                         preferred_element_type=jnp.float32))       # (B, 4H)
        sig = jax.nn.sigmoid(pre)            # 1 EUP push (i, f, o lanes used)
        g_g = jnp.tanh(pre[:, 2 * H:3 * H])  # 1 EUP push (g lanes)
        i_g = sig[:, 0 * H:1 * H]
        f_g = sig[:, 1 * H:2 * H]
        o_g = sig[:, 3 * H:4 * H]
        c = f_g * c + i_g * g_g
        h = o_g * jnp.tanh(c)                # 1 EUP push

    # h2o on concat(h_n, pct) == h @ W[:, :H].T + (pct @ W[:, H:].T + b)
    w_h = whead_ref[pl.ds(0, H), :]                                 # (H, O)
    logits = (jnp.dot(h, w_h, preferred_element_type=jnp.float32)
              + pct_bias)                                           # (B, O)

    # LogSoftmax along dim=1
    m = jnp.max(logits, axis=1, keepdims=True)
    z = logits - m
    out_ref[...] = z - jnp.log(jnp.sum(jnp.exp(z), axis=1, keepdims=True))


def flz_lstm_forward(name, pct, hidden, params):
    """name: (B, T, I) batch_first (matches the PyTorch call convention).
       pct : (B, 4)
       hidden: (h0, c0), each (1, B, H)
       Returns (log_probs (B, O), hidden) -- hidden passed through unchanged,
       exactly like the PyTorch module."""
    h0, c0 = hidden
    B, T, I = name.shape
    H = h0.shape[-1]
    O = params["whead"].shape[-1]

    # Time-major flatten: row t*B + b (one fused transpose+reshape in XLA).
    x2d = jnp.transpose(name, (1, 0, 2)).reshape(T * B, I).astype(jnp.float32)
    hc0 = jnp.concatenate(
        [h0.reshape(1, B, H), c0.reshape(1, B, H)], axis=0).astype(jnp.float32)
    pct_f32 = pct.astype(jnp.float32)

    # Advisory cost estimate so XLA does not treat the custom call as free.
    flops = (2 * T * B * I * 4 * H          # hoisted input projection
             + 2 * T * B * H * 4 * H        # recurrent matmuls
             + 2 * B * H * O + 2 * B * 4 * O)
    transcendentals = 6 * T * B * H + 2 * B * O
    bytes_accessed = 4 * (T * B * I + B * 4 + 2 * B * H
                          + (I + 1) * 4 * H + H * 4 * H
                          + (H + 5) * O + B * O)

    out = pl.pallas_call(
        flz_lstm_kernel,
        out_shape=jax.ShapeDtypeStruct((B, O), jnp.float32),
        in_specs=[pl.BlockSpec(memory_space=pltpu.MemorySpace.VMEM)] * 6,
        out_specs=pl.BlockSpec(memory_space=pltpu.MemorySpace.VMEM),
        cost_estimate=pl.CostEstimate(flops=flops,
                                      transcendentals=transcendentals,
                                      bytes_accessed=bytes_accessed),
    )(x2d, pct_f32, hc0, params["wihb"], params["whh"], params["whead"])
    return out, hidden


def init_params(key, input_size, hidden_size, output_size):
    """Deterministic init mirroring PyTorch default initializers (shapes only)."""
    H, I, O = hidden_size, input_size, output_size
    k = 1.0 / math.sqrt(H)
    ks = jax.random.split(key, 6)
    w_ih = jax.random.uniform(ks[0], (4 * H, I), jnp.float32, -k, k)
    w_hh = jax.random.uniform(ks[1], (4 * H, H), jnp.float32, -k, k)
    b_ih = jax.random.uniform(ks[2], (4 * H,), jnp.float32, -k, k)
    b_hh = jax.random.uniform(ks[3], (4 * H,), jnp.float32, -k, k)
    k2 = 1.0 / math.sqrt(H + 4)
    w_out = jax.random.uniform(ks[4], (O, H + 4), jnp.float32, -k2, k2)
    b_out = jax.random.uniform(ks[5], (O,), jnp.float32, -k2, k2)

    wih_t = w_ih.T                                   # (I, 4H)
    whh_t = w_hh.T                                   # (H, 4H) fused, gate order i,f,g,o
    b_gates = (b_ih + b_hh).reshape(1, 4 * H)
    w_out_h = w_out[:, :H].T                         # (H, O)
    w_out_p = w_out[:, H:].T                         # (4, O)
    b_o = b_out.reshape(1, O)

    return {
        # Packed kernel inputs (6 DMAs total at call time).
        "wihb": jnp.concatenate([wih_t, b_gates], axis=0),          # (I+1, 4H)
        "whh": whh_t,                                               # (H, 4H)
        "whead": jnp.concatenate([w_out_h, w_out_p, b_o], axis=0),  # (H+5, O)
        # Raw layouts for the pure-JAX reference.
        "wih_t": wih_t, "whh_t": whh_t, "b_gates": b_gates,
        "w_out_h": w_out_h, "w_out_p": w_out_p, "b_out": b_o,
    }


def reference_forward(name, pct, hidden, params):
    """Pure-JAX reference with identical math for validation."""
    h0, c0 = hidden
    B, T, I = name.shape
    H = h0.shape[-1]
    h = h0.reshape(B, H)
    c = c0.reshape(B, H)
    for t in range(T):
        x_t = name[:, t, :]
        gates = x_t @ params["wih_t"] + h @ params["whh_t"] + params["b_gates"]
        i_g = jax.nn.sigmoid(gates[:, 0 * H:1 * H])
        f_g = jax.nn.sigmoid(gates[:, 1 * H:2 * H])
        g_g = jnp.tanh(gates[:, 2 * H:3 * H])
        o_g = jax.nn.sigmoid(gates[:, 3 * H:4 * H])
        c = f_g * c + i_g * g_g
        h = o_g * jnp.tanh(c)
    logits = h @ params["w_out_h"] + pct @ params["w_out_p"] + params["b_out"]
    return jax.nn.log_softmax(logits, axis=1)


if __name__ == "__main__":
    B, T, I, H, O = 2, 8, 8, 32, 16

    key = jax.random.PRNGKey(0)
    k_name, k_pct, k_params = jax.random.split(key, 3)

    name = jax.random.normal(k_name, (B, T, I), jnp.float32)
    pct = jax.random.normal(k_pct, (B, 4), jnp.float32)
    hidden = (jnp.zeros((1, B, H), jnp.float32),
              jnp.zeros((1, B, H), jnp.float32))
    params = init_params(k_params, I, H, O)

    out, hidden_out = flz_lstm_forward(name, pct, hidden, params)
    out = jax.block_until_ready(out)

    ref = reference_forward(name, pct, hidden, params)
    assert out.shape == (B, O)
    assert jnp.allclose(out, ref, atol=1e-4, rtol=1e-4), "mismatch vs reference"

    print("KERNEL_OK")
</pallas_src>

<mosaic_0001>
module attributes {stable_mosaic.version = 11 : i64} {
  func.func @flz_lstm_kernel(%arg0: memref<16x8xf32, #tpu.memory_space<vmem>>, %arg1: memref<2x4xf32, #tpu.memory_space<vmem>>, %arg2: memref<2x2x32xf32, #tpu.memory_space<vmem>>, %arg3: memref<9x128xf32, #tpu.memory_space<vmem>>, %arg4: memref<32x128xf32, #tpu.memory_space<vmem>>, %arg5: memref<37x16xf32, #tpu.memory_space<vmem>>, %arg6: memref<2x16xf32, #tpu.memory_space<vmem>>) attributes {dimension_semantics = [], scalar_prefetch = 0 : i64, scratch_operands = 0 : i64, tpu.core_type = #tpu.core_type<tc>} {
    %c0 = arith.constant 0 : index
    %c0_0 = arith.constant 0 : index
    %0 = vector.load %arg3[%c0, %c0_0] : memref<9x128xf32, #tpu.memory_space<vmem>>, vector<8x128xf32>
    %c8 = arith.constant 8 : index
    %c0_1 = arith.constant 0 : index
    %1 = vector.load %arg3[%c8, %c0_1] : memref<9x128xf32, #tpu.memory_space<vmem>>, vector<1x128xf32>
    %c0_2 = arith.constant 0 : index
    %c0_3 = arith.constant 0 : index
    %2 = vector.load %arg0[%c0_2, %c0_3] : memref<16x8xf32, #tpu.memory_space<vmem>>, vector<16x8xf32>
    %cst = arith.constant dense<0.000000e+00> : vector<16x128xf32>
    %3 = tpu.matmul %2, %0, %cst {dimension_numbers = #tpu.dot_dimension_numbers<[1], [0], [0], [1], [0, 0, 1, 1], [], []>} : vector<16x8xf32>, vector<8x128xf32>, vector<16x128xf32> -> vector<16x128xf32>
    %4 = vector.broadcast %1 : vector<1x128xf32> to vector<16x128xf32>
    %5 = arith.addf %3, %4 : vector<16x128xf32>
    %c32 = arith.constant 32 : index
    %c0_4 = arith.constant 0 : index
    %6 = vector.load %arg5[%c32, %c0_4] : memref<37x16xf32, #tpu.memory_space<vmem>>, vector<4x16xf32>
    %c36 = arith.constant 36 : index
    %c0_5 = arith.constant 0 : index
    %7 = vector.load %arg5[%c36, %c0_5] : memref<37x16xf32, #tpu.memory_space<vmem>>, vector<1x16xf32>
    %c0_6 = arith.constant 0 : index
    %c0_7 = arith.constant 0 : index
    %8 = vector.load %arg1[%c0_6, %c0_7] : memref<2x4xf32, #tpu.memory_space<vmem>>, vector<2x4xf32>
    %cst_8 = arith.constant dense<0.000000e+00> : vector<2x16xf32>
    %9 = tpu.matmul %8, %6, %cst_8 {dimension_numbers = #tpu.dot_dimension_numbers<[1], [0], [0], [1], [0, 0, 1, 1], [], []>} : vector<2x4xf32>, vector<4x16xf32>, vector<2x16xf32> -> vector<2x16xf32>
    %10 = vector.broadcast %7 : vector<1x16xf32> to vector<2x16xf32>
    %11 = arith.addf %9, %10 : vector<2x16xf32>
    %c0_9 = arith.constant 0 : index
    %c0_10 = arith.constant 0 : index
    %12 = vector.load %arg4[%c0_9, %c0_10] : memref<32x128xf32, #tpu.memory_space<vmem>>, vector<32x128xf32>
    %c0_11 = arith.constant 0 : index
    %c0_12 = arith.constant 0 : index
    %c0_13 = arith.constant 0 : index
    %13 = vector.load %arg2[%c0_11, %c0_12, %c0_13] : memref<2x2x32xf32, #tpu.memory_space<vmem>>, vector<1x2x32xf32>
    %14 = vector.shape_cast %13 : vector<1x2x32xf32> to vector<2x32xf32>
    %c1 = arith.constant 1 : index
    %c0_14 = arith.constant 0 : index
    %c0_15 = arith.constant 0 : index
    %15 = vector.load %arg2[%c1, %c0_14, %c0_15] : memref<2x2x32xf32, #tpu.memory_space<vmem>>, vector<1x2x32xf32>
    %16 = vector.shape_cast %15 : vector<1x2x32xf32> to vector<2x32xf32>
    %17 = vector.extract_strided_slice %5 {offsets = [0, 0], sizes = [2, 128], strides = [1, 1]} : vector<16x128xf32> to vector<2x128xf32>
    %cst_16 = arith.constant dense<0.000000e+00> : vector<2x128xf32>
    %18 = tpu.matmul %14, %12, %cst_16 {dimension_numbers = #tpu.dot_dimension_numbers<[1], [0], [0], [1], [0, 0, 1, 1], [], []>} : vector<2x32xf32>, vector<32x128xf32>, vector<2x128xf32> -> vector<2x128xf32>
    %19 = arith.addf %17, %18 : vector<2x128xf32>
    %20 = arith.negf %19 : vector<2x128xf32>
    %21 = math.exp %20 : vector<2x128xf32>
    %cst_17 = arith.constant 1.000000e+00 : f32
    %22 = vector.broadcast %cst_17 : f32 to vector<2x128xf32>
    %23 = arith.addf %22, %21 : vector<2x128xf32>
    %24 = arith.divf %22, %23 : vector<2x128xf32>
    %25 = vector.extract_strided_slice %19 {offsets = [0, 64], sizes = [2, 32], strides = [1, 1]} : vector<2x128xf32> to vector<2x32xf32>
    %26 = math.tanh %25 : vector<2x32xf32>
    %27 = vector.extract_strided_slice %24 {offsets = [0, 0], sizes = [2, 32], strides = [1, 1]} : vector<2x128xf32> to vector<2x32xf32>
    %28 = vector.extract_strided_slice %24 {offsets = [0, 32], sizes = [2, 32], strides = [1, 1]} : vector<2x128xf32> to vector<2x32xf32>
    %29 = vector.extract_strided_slice %24 {offsets = [0, 96], sizes = [2, 32], strides = [1, 1]} : vector<2x128xf32> to vector<2x32xf32>
    %30 = arith.mulf %28, %16 : vector<2x32xf32>
    %31 = arith.mulf %27, %26 : vector<2x32xf32>
    %32 = arith.addf %30, %31 : vector<2x32xf32>
    %33 = math.tanh %32 : vector<2x32xf32>
    %34 = arith.mulf %29, %33 : vector<2x32xf32>
    %35 = vector.extract_strided_slice %5 {offsets = [2, 0], sizes = [2, 128], strides = [1, 1]} : vector<16x128xf32> to vector<2x128xf32>
    %cst_18 = arith.constant dense<0.000000e+00> : vector<2x128xf32>
    %36 = tpu.matmul %34, %12, %cst_18 {dimension_numbers = #tpu.dot_dimension_numbers<[1], [0], [0], [1], [0, 0, 1, 1], [], []>} : vector<2x32xf32>, vector<32x128xf32>, vector<2x128xf32> -> vector<2x128xf32>
    %37 = arith.addf %35, %36 : vector<2x128xf32>
    %38 = arith.negf %37 : vector<2x128xf32>
    %39 = math.exp %38 : vector<2x128xf32>
    %cst_19 = arith.constant 1.000000e+00 : f32
    %40 = vector.broadcast %cst_19 : f32 to vector<2x128xf32>
    %41 = arith.addf %40, %39 : vector<2x128xf32>
    %42 = arith.divf %40, %41 : vector<2x128xf32>
    %43 = vector.extract_strided_slice %37 {offsets = [0, 64], sizes = [2, 32], strides = [1, 1]} : vector<2x128xf32> to vector<2x32xf32>
    %44 = math.tanh %43 : vector<2x32xf32>
    %45 = vector.extract_strided_slice %42 {offsets = [0, 0], sizes = [2, 32], strides = [1, 1]} : vector<2x128xf32> to vector<2x32xf32>
    %46 = vector.extract_strided_slice %42 {offsets = [0, 32], sizes = [2, 32], strides = [1, 1]} : vector<2x128xf32> to vector<2x32xf32>
    %47 = vector.extract_strided_slice %42 {offsets = [0, 96], sizes = [2, 32], strides = [1, 1]} : vector<2x128xf32> to vector<2x32xf32>
    %48 = arith.mulf %46, %32 : vector<2x32xf32>
    %49 = arith.mulf %45, %44 : vector<2x32xf32>
    %50 = arith.addf %48, %49 : vector<2x32xf32>
    %51 = math.tanh %50 : vector<2x32xf32>
    %52 = arith.mulf %47, %51 : vector<2x32xf32>
    %53 = vector.extract_strided_slice %5 {offsets = [4, 0], sizes = [2, 128], strides = [1, 1]} : vector<16x128xf32> to vector<2x128xf32>
    %cst_20 = arith.constant dense<0.000000e+00> : vector<2x128xf32>
    %54 = tpu.matmul %52, %12, %cst_20 {dimension_numbers = #tpu.dot_dimension_numbers<[1], [0], [0], [1], [0, 0, 1, 1], [], []>} : vector<2x32xf32>, vector<32x128xf32>, vector<2x128xf32> -> vector<2x128xf32>
    %55 = arith.addf %53, %54 : vector<2x128xf32>
    %56 = arith.negf %55 : vector<2x128xf32>
    %57 = math.exp %56 : vector<2x128xf32>
    %cst_21 = arith.constant 1.000000e+00 : f32
    %58 = vector.broadcast %cst_21 : f32 to vector<2x128xf32>
    %59 = arith.addf %58, %57 : vector<2x128xf32>
    %60 = arith.divf %58, %59 : vector<2x128xf32>
    %61 = vector.extract_strided_slice %55 {offsets = [0, 64], sizes = [2, 32], strides = [1, 1]} : vector<2x128xf32> to vector<2x32xf32>
    %62 = math.tanh %61 : vector<2x32xf32>
    %63 = vector.extract_strided_slice %60 {offsets = [0, 0], sizes = [2, 32], strides = [1, 1]} : vector<2x128xf32> to vector<2x32xf32>
    %64 = vector.extract_strided_slice %60 {offsets = [0, 32], sizes = [2, 32], strides = [1, 1]} : vector<2x128xf32> to vector<2x32xf32>
    %65 = vector.extract_strided_slice %60 {offsets = [0, 96], sizes = [2, 32], strides = [1, 1]} : vector<2x128xf32> to vector<2x32xf32>
    %66 = arith.mulf %64, %50 : vector<2x32xf32>
    %67 = arith.mulf %63, %62 : vector<2x32xf32>
    %68 = arith.addf %66, %67 : vector<2x32xf32>
    %69 = math.tanh %68 : vector<2x32xf32>
    %70 = arith.mulf %65, %69 : vector<2x32xf32>
    %71 = vector.extract_strided_slice %5 {offsets = [6, 0], sizes = [2, 128], strides = [1, 1]} : vector<16x128xf32> to vector<2x128xf32>
    %cst_22 = arith.constant dense<0.000000e+00> : vector<2x128xf32>
    %72 = tpu.matmul %70, %12, %cst_22 {dimension_numbers = #tpu.dot_dimension_numbers<[1], [0], [0], [1], [0, 0, 1, 1], [], []>} : vector<2x32xf32>, vector<32x128xf32>, vector<2x128xf32> -> vector<2x128xf32>
    %73 = arith.addf %71, %72 : vector<2x128xf32>
    %74 = arith.negf %73 : vector<2x128xf32>
    %75 = math.exp %74 : vector<2x128xf32>
    %cst_23 = arith.constant 1.000000e+00 : f32
    %76 = vector.broadcast %cst_23 : f32 to vector<2x128xf32>
    %77 = arith.addf %76, %75 : vector<2x128xf32>
    %78 = arith.divf %76, %77 : vector<2x128xf32>
    %79 = vector.extract_strided_slice %73 {offsets = [0, 64], sizes = [2, 32], strides = [1, 1]} : vector<2x128xf32> to vector<2x32xf32>
    %80 = math.tanh %79 : vector<2x32xf32>
    %81 = vector.extract_strided_slice %78 {offsets = [0, 0], sizes = [2, 32], strides = [1, 1]} : vector<2x128xf32> to vector<2x32xf32>
    %82 = vector.extract_strided_slice %78 {offsets = [0, 32], sizes = [2, 32], strides = [1, 1]} : vector<2x128xf32> to vector<2x32xf32>
    %83 = vector.extract_strided_slice %78 {offsets = [0, 96], sizes = [2, 32], strides = [1, 1]} : vector<2x128xf32> to vector<2x32xf32>
    %84 = arith.mulf %82, %68 : vector<2x32xf32>
    %85 = arith.mulf %81, %80 : vector<2x32xf32>
    %86 = arith.addf %84, %85 : vector<2x32xf32>
    %87 = math.tanh %86 : vector<2x32xf32>
    %88 = arith.mulf %83, %87 : vector<2x32xf32>
    %89 = vector.extract_strided_slice %5 {offsets = [8, 0], sizes = [2, 128], strides = [1, 1]} : vector<16x128xf32> to vector<2x128xf32>
    %cst_24 = arith.constant dense<0.000000e+00> : vector<2x128xf32>
    %90 = tpu.matmul %88, %12, %cst_24 {dimension_numbers = #tpu.dot_dimension_numbers<[1], [0], [0], [1], [0, 0, 1, 1], [], []>} : vector<2x32xf32>, vector<32x128xf32>, vector<2x128xf32> -> vector<2x128xf32>
    %91 = arith.addf %89, %90 : vector<2x128xf32>
    %92 = arith.negf %91 : vector<2x128xf32>
    %93 = math.exp %92 : vector<2x128xf32>
    %cst_25 = arith.constant 1.000000e+00 : f32
    %94 = vector.broadcast %cst_25 : f32 to vector<2x128xf32>
    %95 = arith.addf %94, %93 : vector<2x128xf32>
    %96 = arith.divf %94, %95 : vector<2x128xf32>
    %97 = vector.extract_strided_slice %91 {offsets = [0, 64], sizes = [2, 32], strides = [1, 1]} : vector<2x128xf32> to vector<2x32xf32>
    %98 = math.tanh %97 : vector<2x32xf32>
    %99 = vector.extract_strided_slice %96 {offsets = [0, 0], sizes = [2, 32], strides = [1, 1]} : vector<2x128xf32> to vector<2x32xf32>
    %100 = vector.extract_strided_slice %96 {offsets = [0, 32], sizes = [2, 32], strides = [1, 1]} : vector<2x128xf32> to vector<2x32xf32>
    %101 = vector.extract_strided_slice %96 {offsets = [0, 96], sizes = [2, 32], strides = [1, 1]} : vector<2x128xf32> to vector<2x32xf32>
    %102 = arith.mulf %100, %86 : vector<2x32xf32>
    %103 = arith.mulf %99, %98 : vector<2x32xf32>
    %104 = arith.addf %102, %103 : vector<2x32xf32>
    %105 = math.tanh %104 : vector<2x32xf32>
    %106 = arith.mulf %101, %105 : vector<2x32xf32>
    %107 = vector.extract_strided_slice %5 {offsets = [10, 0], sizes = [2, 128], strides = [1, 1]} : vector<16x128xf32> to vector<2x128xf32>
    %cst_26 = arith.constant dense<0.000000e+00> : vector<2x128xf32>
    %108 = tpu.matmul %106, %12, %cst_26 {dimension_numbers = #tpu.dot_dimension_numbers<[1], [0], [0], [1], [0, 0, 1, 1], [], []>} : vector<2x32xf32>, vector<32x128xf32>, vector<2x128xf32> -> vector<2x128xf32>
    %109 = arith.addf %107, %108 : vector<2x128xf32>
    %110 = arith.negf %109 : vector<2x128xf32>
    %111 = math.exp %110 : vector<2x128xf32>
    %cst_27 = arith.constant 1.000000e+00 : f32
    %112 = vector.broadcast %cst_27 : f32 to vector<2x128xf32>
    %113 = arith.addf %112, %111 : vector<2x128xf32>
    %114 = arith.divf %112, %113 : vector<2x128xf32>
    %115 = vector.extract_strided_slice %109 {offsets = [0, 64], sizes = [2, 32], strides = [1, 1]} : vector<2x128xf32> to vector<2x32xf32>
    %116 = math.tanh %115 : vector<2x32xf32>
    %117 = vector.extract_strided_slice %114 {offsets = [0, 0], sizes = [2, 32], strides = [1, 1]} : vector<2x128xf32> to vector<2x32xf32>
    %118 = vector.extract_strided_slice %114 {offsets = [0, 32], sizes = [2, 32], strides = [1, 1]} : vector<2x128xf32> to vector<2x32xf32>
    %119 = vector.extract_strided_slice %114 {offsets = [0, 96], sizes = [2, 32], strides = [1, 1]} : vector<2x128xf32> to vector<2x32xf32>
    %120 = arith.mulf %118, %104 : vector<2x32xf32>
    %121 = arith.mulf %117, %116 : vector<2x32xf32>
    %122 = arith.addf %120, %121 : vector<2x32xf32>
    %123 = math.tanh %122 : vector<2x32xf32>
    %124 = arith.mulf %119, %123 : vector<2x32xf32>
    %125 = vector.extract_strided_slice %5 {offsets = [12, 0], sizes = [2, 128], strides = [1, 1]} : vector<16x128xf32> to vector<2x128xf32>
    %cst_28 = arith.constant dense<0.000000e+00> : vector<2x128xf32>
    %126 = tpu.matmul %124, %12, %cst_28 {dimension_numbers = #tpu.dot_dimension_numbers<[1], [0], [0], [1], [0, 0, 1, 1], [], []>} : vector<2x32xf32>, vector<32x128xf32>, vector<2x128xf32> -> vector<2x128xf32>
    %127 = arith.addf %125, %126 : vector<2x128xf32>
    %128 = arith.negf %127 : vector<2x128xf32>
    %129 = math.exp %128 : vector<2x128xf32>
    %cst_29 = arith.constant 1.000000e+00 : f32
    %130 = vector.broadcast %cst_29 : f32 to vector<2x128xf32>
    %131 = arith.addf %130, %129 : vector<2x128xf32>
    %132 = arith.divf %130, %131 : vector<2x128xf32>
    %133 = vector.extract_strided_slice %127 {offsets = [0, 64], sizes = [2, 32], strides = [1, 1]} : vector<2x128xf32> to vector<2x32xf32>
    %134 = math.tanh %133 : vector<2x32xf32>
    %135 = vector.extract_strided_slice %132 {offsets = [0, 0], sizes = [2, 32], strides = [1, 1]} : vector<2x128xf32> to vector<2x32xf32>
    %136 = vector.extract_strided_slice %132 {offsets = [0, 32], sizes = [2, 32], strides = [1, 1]} : vector<2x128xf32> to vector<2x32xf32>
    %137 = vector.extract_strided_slice %132 {offsets = [0, 96], sizes = [2, 32], strides = [1, 1]} : vector<2x128xf32> to vector<2x32xf32>
    %138 = arith.mulf %136, %122 : vector<2x32xf32>
    %139 = arith.mulf %135, %134 : vector<2x32xf32>
    %140 = arith.addf %138, %139 : vector<2x32xf32>
    %141 = math.tanh %140 : vector<2x32xf32>
    %142 = arith.mulf %137, %141 : vector<2x32xf32>
    %143 = vector.extract_strided_slice %5 {offsets = [14, 0], sizes = [2, 128], strides = [1, 1]} : vector<16x128xf32> to vector<2x128xf32>
    %cst_30 = arith.constant dense<0.000000e+00> : vector<2x128xf32>
    %144 = tpu.matmul %142, %12, %cst_30 {dimension_numbers = #tpu.dot_dimension_numbers<[1], [0], [0], [1], [0, 0, 1, 1], [], []>} : vector<2x32xf32>, vector<32x128xf32>, vector<2x128xf32> -> vector<2x128xf32>
    %145 = arith.addf %143, %144 : vector<2x128xf32>
    %146 = arith.negf %145 : vector<2x128xf32>
    %147 = math.exp %146 : vector<2x128xf32>
    %cst_31 = arith.constant 1.000000e+00 : f32
    %148 = vector.broadcast %cst_31 : f32 to vector<2x128xf32>
    %149 = arith.addf %148, %147 : vector<2x128xf32>
    %150 = arith.divf %148, %149 : vector<2x128xf32>
    %151 = vector.extract_strided_slice %145 {offsets = [0, 64], sizes = [2, 32], strides = [1, 1]} : vector<2x128xf32> to vector<2x32xf32>
    %152 = math.tanh %151 : vector<2x32xf32>
    %153 = vector.extract_strided_slice %150 {offsets = [0, 0], sizes = [2, 32], strides = [1, 1]} : vector<2x128xf32> to vector<2x32xf32>
    %154 = vector.extract_strided_slice %150 {offsets = [0, 32], sizes = [2, 32], strides = [1, 1]} : vector<2x128xf32> to vector<2x32xf32>
    %155 = vector.extract_strided_slice %150 {offsets = [0, 96], sizes = [2, 32], strides = [1, 1]} : vector<2x128xf32> to vector<2x32xf32>
    %156 = arith.mulf %154, %140 : vector<2x32xf32>
    %157 = arith.mulf %153, %152 : vector<2x32xf32>
    %158 = arith.addf %156, %157 : vector<2x32xf32>
    %159 = math.tanh %158 : vector<2x32xf32>
    %160 = arith.mulf %155, %159 : vector<2x32xf32>
    %c0_32 = arith.constant 0 : index
    %c0_33 = arith.constant 0 : index
    %161 = vector.load %arg5[%c0_32, %c0_33] : memref<37x16xf32, #tpu.memory_space<vmem>>, vector<32x16xf32>
    %cst_34 = arith.constant dense<0.000000e+00> : vector<2x16xf32>
    %162 = tpu.matmul %160, %161, %cst_34 {dimension_numbers = #tpu.dot_dimension_numbers<[1], [0], [0], [1], [0, 0, 1, 1], [], []>} : vector<2x32xf32>, vector<32x16xf32>, vector<2x16xf32> -> vector<2x16xf32>
    %163 = arith.addf %162, %11 : vector<2x16xf32>
    %cst_35 = arith.constant dense<0xFF800000> : vector<2xf32>
    %164 = vector.multi_reduction <maximumf>, %163, %cst_35 [1] : vector<2x16xf32> to vector<2xf32>
    %165 = vector.shape_cast %164 : vector<2xf32> to vector<2x1xf32>
    %166 = vector.broadcast %165 : vector<2x1xf32> to vector<2x16xf32>
    %167 = arith.subf %163, %166 : vector<2x16xf32>
    %168 = math.exp %167 : vector<2x16xf32>
    %cst_36 = arith.constant dense<0.000000e+00> : vector<2xf32>
    %169 = vector.multi_reduction <add>, %168, %cst_36 [1] : vector<2x16xf32> to vector<2xf32>
    %170 = vector.shape_cast %169 : vector<2xf32> to vector<2x1xf32>
    %171 = math.log %170 : vector<2x1xf32>
    %172 = vector.broadcast %171 : vector<2x1xf32> to vector<2x16xf32>
    %173 = arith.subf %167, %172 : vector<2x16xf32>
    %c0_37 = arith.constant 0 : index
    %c0_38 = arith.constant 0 : index
    %174 = vector.load %arg6[%c0_37, %c0_38] : memref<2x16xf32, #tpu.memory_space<vmem>>, vector<2x16xf32>
    tpu.vector_store %arg6[%c0_37, %c0_38], %173 {strides = array<i32>} : memref<2x16xf32, #tpu.memory_space<vmem>>, vector<2x16xf32>,
    return
  }
}

</mosaic_0001>

<bundles_post_ra>
// kernel: tpu_custom_call.1
= control target key start
LH: loop header
LB: loop body
LE: loop exit
PB: predicated region body
PF: predicated region fallthrough
CT: control target
= control target key end

     0   :  { %vm32_vm0 = vcmask 64512   ;;  %vm125_vm1 = vcmask 1043456   ;;  %v1498_v6 = vmov 0.0|0.0   ;;  %v1499_v7 = vmov 0.0   ;;  %s1721_s0 = inlined_call_operand.vmem [shape: f32[16,8], index: 0, kind: input, shape index: {}]   ;;  %s1722_s1 = inlined_call_operand.vmem [shape: f32[2,4], index: 1, kind: input, shape index: {}]   ;;  %s1723_s2 = inlined_call_operand.vmem [shape: f32[2,2,32], index: 2, kind: input, shape index: {}]   ;;  %s1724_s3 = inlined_call_operand.vmem [shape: f32[9,128], index: 3, kind: input, shape index: {}]   ;;  %s1725_s4 = inlined_call_operand.vmem [shape: f32[32,128], index: 4, kind: input, shape index: {}]   ;;  %s1726_s5 = inlined_call_operand.vmem [shape: f32[37,16], index: 5, kind: input, shape index: {}]   ;;  %s1727_s6 = inlined_call_operand.hbm [shape: f32[2,16], index: 6, kind: output, shape index: {}]  }
   0x1   :  { %v24_v0 = vld [vmem:[%s1724_s3] sm:$0xff]  ;;  %v27_v2 = vld [vmem:[%s1721_s0 + $0x8] sm:$0xff]  ;;  %1350 = vmatprep.subr.bf16.mxu1 %v1498_v6 }
   0x2   :  { %v26_v1 = vld [vmem:[%s1721_s0] sm:$0xff]  ;;  %1235 = vmatprep.subr.mxu0 %v24_v0  ;;  %v200_v5 = vld [vmem:[%s1725_s4 + $0x8] sm:$0xff] }
   0x3   :  { %1237 = vmatprep.mubr.msk.f32.mxu0 %vm32_vm0, %v26_v1  ;;  %v114_v3 = vld [vmem:[%s1726_s5 + $0x20] sm:$0xf]  ;;  %1236 = vmatpush3.msra.mxu0 %v24_v0 }
   0x4   :  { %v199_v4 = vld [vmem:[%s1725_s4] sm:$0xff]  ;;  %1238 = vmatmul.mubr.msk.f32.vlgmr.msra.gmra.mrb[0].mxu0 %vm32_vm0, %v27_v2  ;;  %1240 = vmatprep.subr.mxu0 %v1499_v7 }
   0x5   :  { %v1559_v8 = vpack.c.bf16 %v200_v5, %v199_v4 }
   0x6   :  { %11 = vsyncpa [#allocation3], 0  ;;  %1241 = vmatpush3.msk.msra.mxu0 %vm125_vm1, %v114_v3  ;;  %vm1500_vm2 = vmmov 0   ;;  %v116_v9 = vld [vmem:[%s1722_s1] sm:$0x3]  ;;  %vm121_vm3 = vcmask 31744  }
   0x7   :  { %1242 = vmatprep.mubr.msk.f32.mxu0 %vm1500_vm2, %v1499_v7  ;;  %v201_v10 = vld [vmem:[%s1725_s4 + $0x10] sm:$0xff]  ;;  %v202_v11 = vld [vmem:[%s1725_s4 + $0x18] sm:$0xff]  ;;  %1344 = vmatprep.subr.bf16.mxu0 %v1498_v6  ;;  %v203_v13 = vld [vmem:[%s1723_s2] sm:$0x3]  ;;  %vm206_vm4 = vcmask 261120   ;;  %s1501_s16 = smov 64  }
   0x8   :  { %1352 = vmatpush3.bf16.msra.mxu1 %v1559_v8  ;;  %1264 = vmatprep.mubr.msk.f32.mxu1 %vm1500_vm2, %v1499_v7  ;;  %v1577_v12 = vpack.c.bf16 %v202_v11, %v201_v10  ;;  %v1161_v14 = vld [vmem:[%s1724_s3 + $0x8] ss:$0 sm:$0xff]  ;;  %v1167_v25 = vld [vmem:[%s1723_s2 + $0x2] sm:$0x3]  ;;  %s1502_s18 = smov 32   ;;  %vm1133_vm5 = vcmask 123904  }
   0x9   :  { %1353 = vmatprep.subr.bf16.mxu1 %v1498_v6  ;;  %1243 = vmatmul.mubr.msk.f32.vlgmr.msra.gmra.mrb[2].mxu0 %vm121_vm3, %v116_v9 }
   0xa   :  { %1346 = vmatpush3.bf16.msra.mxu0 %v1559_v8  ;;  %1253 = vmatprep.mubr.msk.f32.mxu0 %vm1500_vm2, %v1499_v7 }
   0xb   :  { %1347 = vmatprep.subr.bf16.mxu0 %v1498_v6 }
   0xc   :  { %1355 = vmatpush3.bf16.msra.mxu1 %v1577_v12 }
   0xd   :  { %1362 = vmatprep.subr.bf16.mxu1 %v1498_v6 }
   0xe   :  { %1349 = vmatpush3.bf16.msra.mxu0 %v1577_v12 }
   0xf   :  { %1356 = vmatprep.subr.bf16.mxu0 %v1498_v6 }
  0x11   :  { %1254 = vmatmul.mubr.msk.f32.vlgmr.msra.gmra.mrb[4].mxu0 %vm206_vm4, %v203_v13 }
  0x12   :  { %1358 = vmatpush3.bf16.msra.mxu0 %v1559_v8  ;;  %1275 = vmatprep.mubr.msk.f32.mxu0 %vm1500_vm2, %v1499_v7 }
  0x13   :  { %1359 = vmatprep.subr.bf16.mxu0 %v1498_v6 }
  0x16   :  { %1361 = vmatpush3.bf16.msra.mxu0 %v1577_v12 }
  0x17   :  { %1368 = vmatprep.subr.bf16.mxu0 %v1498_v6 }
  0xd7   :  { %v1239_v15 = vpop.f32.mrb[0].mxu0 }
  0xd8   :  { %v1600_v16 = vadd.f32 %v1239_v15, %v1161_v14  ;;  %v105_v17 = vpop.f32.mrb[1].mxu0 }
  0xd9   :  { %v1604_v20 = vadd.f32 %v1161_v14, %v105_v17 }
  0xdc   :  { %v1602_v18 = vpop.f32.mrb[2].mxu0 }
  0xdd   :  { %v1244_v19 = vpop.f32.mrb[3].mxu0 }
  0xe4   :  { %v276_v21 = vpop.f32.mrb[4].mxu0 }
  0xe5   :  { %v280_v22 = vadd.f32 %v276_v21, %v1604_v20  ;;  %v1255_v23 = vpop.f32.mrb[5].mxu0 }
  0xe7   :  { %1406 = vtanh.f32 %v280_v22  ;;  %v1169_v26 = vmul.f32 -1.442695, %v280_v22 }
  0xe9   :  { %1408 = vpow2.f32 %v1169_v26 }
  0xf1   :  { %v1407_v24 = vpop.eup %1406 }
  0xf2   :  { %294 = vrot.lane.b32.xlu0 %v1407_v24, %s1501_s16 }
  0xf3   :  { %v1409_v27 = vpop.eup %1408 }
  0xf4   :  { %v284_v28 = vadd.f32 1.0, %v1409_v27 }
  0xf6   :  { %289 = vrot.lane.b32.xlu0 %v1167_v25, %s1502_s18  ;;  %1410 = vrcp.f32 %v284_v28 }
 0x100   :  { %v1411_v29 = vpop.eup %1410 }
 0x164   :  { %v295_v30 = vpop.permute.xlu0 %294 }
 0x165   :  { %v297_v31 = vmul.f32 %v1411_v29, %v295_v30 }
 0x167   :  { %299 = vrot.lane.b32.xlu1 %v297_v31, %s1502_s18 }
 0x168   :  { %v290_v32 = vpop.permute.xlu0 %289 }
 0x169   :  { %v292_v33 = vmul.f32 %v1411_v29, %v290_v32 }
 0x1d9   :  { %v300_v34 = vpop.permute.xlu1 %299 }
 0x1da   :  { %v302_v35 = vadd.f32 %v300_v34, %v292_v33 }
 0x1dc   :  { %1412 = vtanh.f32 %v302_v35  ;;  %v396_v51 = vrot.slane %v302_v35, 6 }
 0x1e6   :  { %v1413_v36 = vpop.eup %1412 }
 0x1e7   :  { %305 = vrot.lane.b32.xlu1 %v1413_v36, %s1501_s16 }
 0x259   :  { %v306_v37 = vpop.permute.xlu1 %305 }
 0x25a   :  { %v308_v38 = vmul.f32 %v1411_v29, %v306_v37 }
 0x25c   :  { %310 = vrot.lane.b32.xlu0 %v308_v38, %s1502_s18 }
 0x2ce   :  { %v311_v39 = vpop.permute.xlu0 %310 }
 0x2cf   :  { %1265 = vmatmul.mubr.msk.f32.vlgmr.msra.gmra.mrb[0].mxu1 %vm206_vm4, %v311_v39 }
 0x2d0   :  { %1364 = vmatpush3.bf16.msra.mxu1 %v1559_v8  ;;  %1286 = vmatprep.mubr.msk.f32.mxu1 %vm1500_vm2, %v1499_v7 }
 0x2d1   :  { %1365 = vmatprep.subr.bf16.mxu1 %v1498_v6 }
 0x2d4   :  { %1367 = vmatpush3.bf16.msra.mxu1 %v1577_v12 }
 0x2d5   :  { %1374 = vmatprep.subr.bf16.mxu1 %v1498_v6 }
 0x3a2   :  { %v380_v40 = vpop.f32.mrb[0].mxu1 }
 0x3a3   :  { %v385_v41 = vrot.slane %v380_v40, 6  ;;  %v1266_v42 = vpop.f32.mrb[1].mxu1 }
 0x3a5   :  { %v387_v43 = vadd.f32 %v385_v41, %v1604_v20 }
 0x3a7   :  { %1414 = vtanh.f32 %v387_v43  ;;  %v1171_v45 = vmul.f32 -1.442695, %v387_v43 }
 0x3a9   :  { %1416 = vpow2.f32 %v1171_v45 }
 0x3b1   :  { %v1415_v44 = vpop.eup %1414 }
 0x3b2   :  { %400 = vrot.lane.b32.xlu1 %v1415_v44, %s1501_s16 }
 0x3b3   :  { %v1417_v46 = vpop.eup %1416 }
 0x3b4   :  { %v391_v47 = vadd.f32 1.0, %v1417_v46 }
 0x3b6   :  { %1418 = vrcp.f32 %v391_v47 }
 0x3c0   :  { %v1419_v48 = vpop.eup %1418 }
 0x3c1   :  { %v398_v52 = vmul.f32 %v1419_v48, %v396_v51 }
 0x424   :  { %v401_v49 = vpop.permute.xlu1 %400 }
 0x425   :  { %v403_v50 = vmul.f32 %v1419_v48, %v401_v49 }
 0x427   :  { %405 = vrot.lane.b32.xlu0 %v403_v50, %s1502_s18 }
 0x499   :  { %v406_v53 = vpop.permute.xlu0 %405 }
 0x49a   :  { %v408_v54 = vadd.f32 %v406_v53, %v398_v52 }
 0x49c   :  { %1420 = vtanh.f32 %v408_v54  ;;  %v503_v10 = vrot.slane %v408_v54, 6 }
 0x4a6   :  { %v1421_v55 = vpop.eup %1420 }
 0x4a7   :  { %411 = vrot.lane.b32.xlu1 %v1421_v55, %s1501_s16 }
 0x519   :  { %v412_v56 = vpop.permute.xlu1 %411 }
 0x51a   :  { %v414_v57 = vmul.f32 %v1419_v48, %v412_v56 }
 0x51c   :  { %v416_v58 = vrot.slane %v414_v57, 2 }
 0x51e   :  { %417 = vrot.lane.b32.xlu0 %v416_v58, %s1502_s18 }
 0x590   :  { %v418_v59 = vpop.permute.xlu0 %417 }
 0x591   :  { %1276 = vmatmul.mubr.msk.f32.vlgmr.msra.gmra.mrb[6].mxu0 %vm206_vm4, %v418_v59 }
 0x592   :  { %1370 = vmatpush3.bf16.msra.mxu0 %v1559_v8  ;;  %1297 = vmatprep.mubr.msk.f32.mxu0 %vm1500_vm2, %v1499_v7 }
 0x593   :  { %1371 = vmatprep.subr.bf16.mxu0 %v1498_v6 }
 0x596   :  { %1373 = vmatpush3.bf16.msra.mxu0 %v1577_v12 }
 0x597   :  { %1380 = vmatprep.subr.bf16.mxu0 %v1498_v6 }
 0x664   :  { %v487_v60 = vpop.f32.mrb[6].mxu0 }
 0x665   :  { %v492_v61 = vrot.slane %v487_v60, 4  ;;  %v1277_v62 = vpop.f32.mrb[7].mxu0 }
 0x667   :  { %v494_v63 = vadd.f32 %v492_v61, %v1604_v20 }
 0x669   :  { %1422 = vtanh.f32 %v494_v63  ;;  %v1173_v1 = vmul.f32 -1.442695, %v494_v63 }
 0x66b   :  { %1424 = vpow2.f32 %v1173_v1 }
 0x673   :  { %v1423_v0 = vpop.eup %1422 }
 0x674   :  { %507 = vrot.lane.b32.xlu1 %v1423_v0, %s1501_s16 }
 0x675   :  { %v1425_v2 = vpop.eup %1424 }
 0x676   :  { %v498_v3 = vadd.f32 1.0, %v1425_v2 }
 0x678   :  { %1426 = vrcp.f32 %v498_v3 }
 0x682   :  { %v1427_v4 = vpop.eup %1426 }
 0x683   :  { %v505_v11 = vmul.f32 %v1427_v4, %v503_v10 }
 0x6e6   :  { %v508_v5 = vpop.permute.xlu1 %507 }
 0x6e7   :  { %v510_v9 = vmul.f32 %v1427_v4, %v508_v5 }
 0x6e9   :  { %512 = vrot.lane.b32.xlu0 %v510_v9, %s1502_s18 }
 0x75b   :  { %v513_v13 = vpop.permute.xlu0 %512 }
 0x75c   :  { %v515_v14 = vadd.f32 %v513_v13, %v505_v11 }
 0x75e   :  { %1428 = vtanh.f32 %v515_v14  ;;  %v610_v34 = vrot.slane %v515_v14, 6 }
 0x768   :  { %v1429_v15 = vpop.eup %1428 }
 0x769   :  { %518 = vrot.lane.b32.xlu1 %v1429_v15, %s1501_s16 }
 0x7db   :  { %v519_v17 = vpop.permute.xlu1 %518 }
 0x7dc   :  { %v521_v19 = vmul.f32 %v1427_v4, %v519_v17 }
 0x7de   :  { %v523_v21 = vrot.slane %v521_v19, 4 }
 0x7e0   :  { %524 = vrot.lane.b32.xlu0 %v523_v21, %s1502_s18 }
 0x852   :  { %v525_v22 = vpop.permute.xlu0 %524 }
 0x853   :  { %1287 = vmatmul.mubr.msk.f32.vlgmr.msra.gmra.mrb[2].mxu1 %vm206_vm4, %v525_v22 }
 0x854   :  { %1376 = vmatpush3.bf16.msra.mxu1 %v1559_v8  ;;  %1308 = vmatprep.mubr.msk.f32.mxu1 %vm1500_vm2, %v1499_v7 }
 0x855   :  { %1377 = vmatprep.subr.bf16.mxu1 %v1498_v6 }
 0x858   :  { %1379 = vmatpush3.bf16.msra.mxu1 %v1577_v12 }
 0x859   :  { %1386 = vmatprep.subr.bf16.mxu1 %v1498_v6 }
 0x926   :  { %v594_v23 = vpop.f32.mrb[2].mxu1 }
 0x927   :  { %v599_v24 = vrot.slane %v594_v23, 2  ;;  %v1288_v25 = vpop.f32.mrb[3].mxu1 }
 0x929   :  { %v601_v26 = vadd.f32 %v599_v24, %v1604_v20 }
 0x92b   :  { %1430 = vtanh.f32 %v601_v26  ;;  %v1175_v28 = vmul.f32 -1.442695, %v601_v26 }
 0x92d   :  { %1432 = vpow2.f32 %v1175_v28 }
 0x935   :  { %v1431_v27 = vpop.eup %1430 }
 0x936   :  { %614 = vrot.lane.b32.xlu1 %v1431_v27, %s1501_s16 }
 0x937   :  { %v1433_v29 = vpop.eup %1432 }
 0x938   :  { %v605_v30 = vadd.f32 1.0, %v1433_v29 }
 0x93a   :  { %1434 = vrcp.f32 %v605_v30 }
 0x944   :  { %v1435_v31 = vpop.eup %1434 }
 0x945   :  { %v612_v35 = vmul.f32 %v1435_v31, %v610_v34 }
 0x9a8   :  { %v615_v32 = vpop.permute.xlu1 %614 }
 0x9a9   :  { %v617_v33 = vmul.f32 %v1435_v31, %v615_v32 }
 0x9ab   :  { %619 = vrot.lane.b32.xlu0 %v617_v33, %s1502_s18 }
 0xa1d   :  { %v620_v36 = vpop.permute.xlu0 %619 }
 0xa1e   :  { %v622_v37 = vadd.f32 %v620_v36, %v612_v35 }
 0xa20   :  { %1436 = vtanh.f32 %v622_v37  ;;  %v714_v52 = vrot.slane %v622_v37, 6 }
 0xa2a   :  { %v1437_v20 = vpop.eup %1436 }
 0xa2b   :  { %625 = vrot.lane.b32.xlu1 %v1437_v20, %s1501_s16 }
 0xa9d   :  { %v626_v38 = vpop.permute.xlu1 %625 }
 0xa9e   :  { %v628_v39 = vmul.f32 %v1435_v31, %v626_v38 }
 0xaa0   :  { %v630_v40 = vrot.slane %v628_v39, 6 }
 0xaa2   :  { %631 = vrot.lane.b32.xlu0 %v630_v40, %s1502_s18 }
 0xb14   :  { %v632_v41 = vpop.permute.xlu0 %631 }
 0xb15   :  { %1298 = vmatmul.mubr.msk.f32.vlgmr.msra.gmra.mrb[8].mxu0 %vm206_vm4, %v632_v41 }
 0xb16   :  { %1382 = vmatpush3.bf16.msra.mxu0 %v1559_v8  ;;  %1319 = vmatprep.mubr.msk.f32.mxu0 %vm1500_vm2, %v1499_v7 }
 0xb17   :  { %1383 = vmatprep.subr.bf16.mxu0 %v1498_v6 }
 0xb1a   :  { %1385 = vmatpush3.bf16.msra.mxu0 %v1577_v12 }
 0xbe8   :  { %v701_v42 = vpop.f32.mrb[8].mxu0 }
 0xbe9   :  { %v705_v43 = vadd.f32 %v701_v42, %v1600_v16  ;;  %v1299_v44 = vpop.f32.mrb[9].mxu0 }
 0xbeb   :  { %1438 = vtanh.f32 %v705_v43  ;;  %v1177_v46 = vmul.f32 -1.442695, %v705_v43 }
 0xbed   :  { %1440 = vpow2.f32 %v1177_v46 }
 0xbf5   :  { %v1439_v45 = vpop.eup %1438 }
 0xbf6   :  { %718 = vrot.lane.b32.xlu1 %v1439_v45, %s1501_s16 }
 0xbf7   :  { %v1441_v47 = vpop.eup %1440 }
 0xbf8   :  { %v709_v48 = vadd.f32 1.0, %v1441_v47 }
 0xbfa   :  { %1442 = vrcp.f32 %v709_v48 }
 0xc04   :  { %v1443_v49 = vpop.eup %1442 }
 0xc05   :  { %v716_v53 = vmul.f32 %v1443_v49, %v714_v52 }
 0xc68   :  { %v719_v50 = vpop.permute.xlu1 %718 }
 0xc69   :  { %v721_v51 = vmul.f32 %v1443_v49, %v719_v50 }
 0xc6b   :  { %723 = vrot.lane.b32.xlu0 %v721_v51, %s1502_s18 }
 0xcdd   :  { %v724_v54 = vpop.permute.xlu0 %723 }
 0xcde   :  { %v726_v55 = vadd.f32 %v724_v54, %v716_v53  ;;  %v1054_v54 = vld [vmem:[%s1726_s5 + $0x8] sm:$0xff] }
 0xce0   :  { %1444 = vtanh.f32 %v726_v55 }
 0xcea   :  { %v1445_v56 = vpop.eup %1444 }
 0xceb   :  { %729 = vrot.lane.b32.xlu1 %v1445_v56, %s1501_s16 }
 0xd5d   :  { %v730_v57 = vpop.permute.xlu1 %729 }
 0xd5e   :  { %v732_v58 = vmul.f32 %v1443_v49, %v730_v57  ;;  %v1056_v57 = vld [vmem:[%s1726_s5 + $0x18] sm:$0xff] }
 0xd60   :  { %734 = vrot.lane.b32.xlu0 %v732_v58, %s1502_s18 }
 0xdd2   :  { %v735_v59 = vpop.permute.xlu0 %734 }
 0xdd3   :  { %1309 = vmatmul.mubr.msk.f32.vlgmr.msra.gmra.mrb[4].mxu1 %vm206_vm4, %v735_v59 }
 0xdd4   :  { %1388 = vmatpush3.bf16.msra.mxu1 %v1559_v8  ;;  %1330 = vmatprep.mubr.msk.f32.mxu1 %vm1500_vm2, %v1499_v7 }
 0xdd5   :  { %1389 = vmatprep.subr.bf16.mxu1 %v1498_v6 }
 0xdd8   :  { %1391 = vmatpush3.bf16.msra.mxu1 %v1577_v12  ;;  %v820_v12 = vrot.slane %v726_v55, 6  ;;  %v1055_v55 = vld [vmem:[%s1726_s5 + $0x10] sm:$0xff] }
 0xdd9   :  { %1392 = vmatprep.subr.bf16.mxu1 %v1498_v6  ;;  %v1396_v58 = vpack.c.bf16 %v1056_v57, %v1055_v55 }
 0xea6   :  { %v804_v60 = vpop.f32.mrb[4].mxu1 }
 0xea7   :  { %v809_v61 = vrot.slane %v804_v60, 6  ;;  %v1310_v62 = vpop.f32.mrb[5].mxu1 }
 0xea9   :  { %v811_v63 = vadd.f32 %v809_v61, %v1600_v16 }
 0xeab   :  { %1446 = vtanh.f32 %v811_v63  ;;  %v1179_v1 = vmul.f32 -1.442695, %v811_v63 }
 0xead   :  { %1448 = vpow2.f32 %v1179_v1 }
 0xeb5   :  { %v1447_v0 = vpop.eup %1446 }
 0xeb6   :  { %824 = vrot.lane.b32.xlu1 %v1447_v0, %s1501_s16  ;;  %v1164_v0 = vld [vmem:[%s1726_s5 + $0x24] ss:$0 sm:$0xff] }
 0xeb7   :  { %v1449_v8 = vpop.eup %1448  ;;  %v196_v1 = vadd.f32 %v1164_v0, %v1602_v18 }
 0xeb8   :  { %v815_v2 = vadd.f32 1.0, %v1449_v8 }
 0xeba   :  { %1450 = vrcp.f32 %v815_v2 }
 0xec4   :  { %v1451_v3 = vpop.eup %1450 }
 0xec5   :  { %v822_v9 = vmul.f32 %v1451_v3, %v820_v12 }
 0xf28   :  { %v825_v4 = vpop.permute.xlu1 %824 }
 0xf29   :  { %v827_v5 = vmul.f32 %v1451_v3, %v825_v4 }
 0xf2b   :  { %829 = vrot.lane.b32.xlu0 %v827_v5, %s1502_s18 }
 0xf9d   :  { %v830_v10 = vpop.permute.xlu0 %829 }
 0xf9e   :  { %v832_v11 = vadd.f32 %v830_v10, %v822_v9 }
 0xfa0   :  { %1452 = vtanh.f32 %v832_v11  ;;  %v927_v32 = vrot.slane %v832_v11, 6 }
 0xfaa   :  { %v1453_v13 = vpop.eup %1452 }
 0xfab   :  { %835 = vrot.lane.b32.xlu1 %v1453_v13, %s1501_s16 }
0x101d   :  { %v836_v14 = vpop.permute.xlu1 %835 }
0x101e   :  { %v838_v15 = vmul.f32 %v1451_v3, %v836_v14 }
0x1020   :  { %v840_v17 = vrot.slane %v838_v15, 2 }
0x1022   :  { %841 = vrot.lane.b32.xlu0 %v840_v17, %s1502_s18 }
0x1094   :  { %v842_v19 = vpop.permute.xlu0 %841 }
0x1095   :  { %1320 = vmatmul.mubr.msk.f32.vlgmr.msra.gmra.mrb[10].mxu0 %vm206_vm4, %v842_v19 }
0x1168   :  { %v911_v21 = vpop.f32.mrb[10].mxu0 }
0x1169   :  { %v916_v22 = vrot.slane %v911_v21, 4  ;;  %v1321_v23 = vpop.f32.mrb[11].mxu0 }
0x116b   :  { %v918_v24 = vadd.f32 %v916_v22, %v1600_v16 }
0x116d   :  { %1454 = vtanh.f32 %v918_v24  ;;  %v1181_v26 = vmul.f32 -1.442695, %v918_v24 }
0x116f   :  { %1456 = vpow2.f32 %v1181_v26 }
0x1177   :  { %v1455_v25 = vpop.eup %1454 }
0x1178   :  { %931 = vrot.lane.b32.xlu1 %v1455_v25, %s1501_s16 }
0x1179   :  { %v1457_v27 = vpop.eup %1456 }
0x117a   :  { %v922_v28 = vadd.f32 1.0, %v1457_v27 }
0x117c   :  { %1458 = vrcp.f32 %v922_v28 }
0x1186   :  { %v1459_v29 = vpop.eup %1458 }
0x1187   :  { %v929_v33 = vmul.f32 %v1459_v29, %v927_v32 }
0x11ea   :  { %v932_v30 = vpop.permute.xlu1 %931 }
0x11eb   :  { %v934_v31 = vmul.f32 %v1459_v29, %v932_v30 }
0x11ed   :  { %936 = vrot.lane.b32.xlu0 %v934_v31, %s1502_s18 }
0x125f   :  { %v937_v34 = vpop.permute.xlu0 %936 }
0x1260   :  { %v939_v35 = vadd.f32 %v937_v34, %v929_v33 }
0x1262   :  { %1460 = vtanh.f32 %v939_v35 }
0x126c   :  { %v1461_v36 = vpop.eup %1460 }
0x126d   :  { %942 = vrot.lane.b32.xlu1 %v1461_v36, %s1501_s16 }
0x12df   :  { %v943_v37 = vpop.permute.xlu1 %942 }
0x12e0   :  { %v945_v20 = vmul.f32 %v1459_v29, %v943_v37 }
0x12e2   :  { %v947_v38 = vrot.slane %v945_v20, 4 }
0x12e4   :  { %948 = vrot.lane.b32.xlu0 %v947_v38, %s1502_s18 }
0x1356   :  { %v949_v39 = vpop.permute.xlu0 %948 }
0x1357   :  { %1331 = vmatmul.mubr.msk.f32.vlgmr.msra.gmra.mrb[6].mxu1 %vm206_vm4, %v949_v39 }
0x1358   :  { %1341 = vmatprep.mubr.msk.f32.mxu1 %vm1500_vm2, %v1499_v7  ;;  %v1034_v7 = vrot.slane %v939_v35, 6 }
0x142a   :  { %v1018_v40 = vpop.f32.mrb[6].mxu1 }
0x142b   :  { %v1023_v41 = vrot.slane %v1018_v40, 2  ;;  %v1332_v42 = vpop.f32.mrb[7].mxu1 }
0x142d   :  { %v1025_v43 = vadd.f32 %v1023_v41, %v1600_v16  ;;  %v1053_v16 = vld [vmem:[%s1726_s5] sm:$0xff]  ;;  %s1503_s5 = smov [#allocation2]  }
0x142e   :  { %v1393_v56 = vpack.c.bf16 %v1054_v54, %v1053_v16  ;;  %s1153_s28 = sshll.u32 %s1503_s5, 4  ;;  %s1154_s28 = int_to_ptr.vmem [resolvable:$true] %s1153_s28 }
0x142f   :  { %1462 = vtanh.f32 %v1025_v43  ;;  %v1183_v45 = vmul.f32 -1.442695, %v1025_v43  ;;  %s1474_s29 = scalar_lea.vmem %s1154_s28, 32  ;;  %p1479_p1 = scmp.lt.s32.totalorder %s1154_s28, %s1154_s28 }
0x1430   :  { %1394 = vmatpush3.bf16.msra.mxu1 %v1393_v56  ;;  %p1475_p0 = scmp.ne.s32.totalorder %s1154_s28, %s1474_s29  ;;  %p1480_p2 = scmp.lt.s32.totalorder %s1474_s29, %s1474_s29 }
0x1431   :  { %1464 = vpow2.f32 %v1183_v45  ;;  %1395 = vmatprep.subr.bf16.mxu1 %v1498_v6 }
0x1432   :  { %p1481_p3 = por %p1480_p2, %p1479_p1 }
0x1434   :  { %1397 = vmatpush3.bf16.msra.mxu1 %v1396_v58  ;;  %p1482_p4 = pnand %p1481_p3, %p1475_p0 }
0x1439   :  { %v1463_v44 = vpop.eup %1462 }
0x143a   :  { %1038 = vrot.lane.b32.xlu1 %v1463_v44, %s1501_s16 }
0x143b   :  { %v1465_v46 = vpop.eup %1464 }
0x143c   :  { %v1029_v47 = vadd.f32 1.0, %v1465_v46 }
0x143e   :  { %1466 = vrcp.f32 %v1029_v47 }
0x1448   :  { %v1467_v48 = vpop.eup %1466 }
0x1449   :  { %v1036_v51 = vmul.f32 %v1467_v48, %v1034_v7 }
0x14ac   :  { %v1039_v49 = vpop.permute.xlu1 %1038 }
0x14ad   :  { %v1041_v50 = vmul.f32 %v1467_v48, %v1039_v49 }
0x14af   :  { %1043 = vrot.lane.b32.xlu0 %v1041_v50, %s1502_s18 }
0x1521   :  { %v1044_v52 = vpop.permute.xlu0 %1043 }
0x1522   :  { %v1046_v53 = vadd.f32 %v1044_v52, %v1036_v51 }
0x1524   :  { %1468 = vtanh.f32 %v1046_v53 }
0x152e   :  { %v1469_v59 = vpop.eup %1468 }
0x152f   :  { %1049 = vrot.lane.b32.xlu1 %v1469_v59, %s1501_s16 }
0x15a1   :  { %v1050_v60 = vpop.permute.xlu1 %1049 }
0x15a2   :  { %v1052_v61 = vmul.f32 %v1467_v48, %v1050_v60 }
0x15a4   :  { %v1058_v62 = vrot.slane %v1052_v61, 6 }
0x15a6   :  { %1059 = vrot.lane.b32.xlu0 %v1058_v62, %s1502_s18 }
0x1618   :  { %v1060_v63 = vpop.permute.xlu0 %1059 }
0x1619   :  { %1342 = vmatmul.mubr.msk.f32.vlgmr.msra.gmra.mrb[8].mxu1 %vm206_vm4, %v1060_v63 }
0x16ec   :  { %v1129_v8 = vpop.f32.mrb[8].mxu1 }
0x16ed   :  { %v1130_v6 = vadd.f32 %v1129_v8, %v196_v1  ;;  %v1343_v2 = vpop.f32.mrb[9].mxu1 }
0x16ef   :  { %v1134_v3 = vsel %vm1133_vm5, %v1130_v6, -inf }
0x16f0   :  { %1135 = vmax.xlane.f32.xlu1 %v1134_v3 }
0x177d   :  { %v1136_v4 = vpop.xlane.xlu1 %1135 }
0x177e   :  { %v1137_v5 = vsub.f32 %v1130_v6, %v1136_v4 }
0x1780   :  { %v1138_v12 = vmul.f32 1.442695, %v1137_v5 }
0x1782   :  { %1470 = vpow2.f32 %v1138_v12 }
0x178c   :  { %v1471_v9 = vpop.eup %1470 }
0x178d   :  { %v1140_v10 = vsel %vm1133_vm5, %v1471_v9, 0.0 }
0x178e   :  { %1141 = vadd.xlane.f32.xlu0 %v1140_v10 }
0x181b   :  { %v1142_v11 = vpop.xlane.xlu0 %1141 }
0x181c   :  { %1472 = vlog2.f32 %v1142_v11 }
0x1826   :  { %v1473_v13 = vpop.eup %1472 }
0x1827   :  { %v1144_v18 = vmul.f32 0.6931472, %v1473_v13 }
0x1829   :  { %v1145_v14 = vsub.f32 %v1137_v5, %v1144_v18 }
0x182b   :  { %1146 = vst.msk [vmem:[#allocation2] sm:$0x3] %vm1133_vm5, %v1145_v14 }
0x182c   :  { %1485 = shalt.err (!%p1482_p4)
}
0x182d   :  { %s1486_s8 = scalar_lea.hbm %s1727_s6, 32 }
0x182e   :  { %p1487_p5 = scmp.ne.s32.totalorder %s1727_s6, %s1486_s8  ;;  %p1490_p6 = scmp.lt.u32.totalorder %s1486_s8, %s1727_s6 }
0x1830   :  { %p1492_p7 = pnand %p1490_p6, %p1487_p5 }
0x1832   :  { %1495 = shalt.err (!%p1492_p7)
}
0x1833   :  { %1156 = dma.vmem_to_hbm [thread:$0]  %s1154_s28, 32, %s1727_s6, [#allocation3]  }
0x1834   :  { %1496 = dma.done.wait [#allocation3], 32  }
0x1835   :  { %1497 = vsyncadd [#allocation3], 4294967264 }
0x1836   :  { %1160 = vsyncpa [#allocation3], 1 }

</bundles_post_ra>
